<compile_context>
chip_gen: v5e
topology: v5e:2x2
jax: 0.10.0
libtpu: 0.0.40
codegen_flags: <defaults>
</compile_context>

<pallas_src>
import jax
import jax.numpy as jnp
from jax.experimental import pallas as pl
from jax.experimental.pallas import tpu as pltpu

# ---------------------------------------------------------------------------
# Static sizes (small, consistent with the module's __init__)
# ---------------------------------------------------------------------------
NUM_BUCKETS    = 24            # symbolic_instructions.NO_BUCKETS (synthetic choice)
HIDDEN_DIM     = 250           # hidden_dim in __init__
HIDDEN_PAD     = 256           # 250 padded to a full lane multiple (zero-pad, exact)
TOTAL_EMB_SIZE = 256           # total_emb_size (input dim of dense_1)
N_LANDMARK     = 67
N_R            = 15
HEAD_WIDTHS    = (N_LANDMARK, NUM_BUCKETS, NUM_BUCKETS, N_R)
HEAD_PAD       = 128           # each head gets its own 128-lane tile in the output slab
OUT_PAD        = len(HEAD_WIDTHS) * HEAD_PAD   # 512
VOCAB          = 50
VOCAB_PAD      = 64            # vocab padded to sublane multiple (zero rows, exact)
SEQ_LEN        = 8
BATCH          = 8


# ---------------------------------------------------------------------------
# Pallas kernel: fused text-embed + dense_1/ReLU + fused 4-head matmul + log_softmax
# ---------------------------------------------------------------------------
def _fused_kernel(ids_ref, table_ref, w1_ref, b1_ref, wh_ref, bh_ref, out_ref):
    B = ids_ref.shape[0]

    # ---- text module: embedding lookup + mean pool, done as counts @ table ----
    # counts[b, v] = #{s : ids[b, s] == v}  =>  counts @ table == sum_s table[ids[b, s]]
    ids = ids_ref[...]                                                  # [B, S] int32
    vocab_iota = jax.lax.broadcasted_iota(jnp.int32, (1, VOCAB_PAD), 1)  # [1, Vp]
    counts = jnp.zeros((B, VOCAB_PAD), jnp.float32)
    for s in range(SEQ_LEN):                                            # static unroll (S=8)
        counts = counts + (ids[:, s:s + 1] == vocab_iota).astype(jnp.float32)
    text_emb = jnp.dot(counts, table_ref[...],
                       preferred_element_type=jnp.float32) * (1.0 / SEQ_LEN)   # [B, 256]

    # ---- x = relu(dense_1(text_emb)); hidden padded 250 -> 256 (pad cols exactly 0) ----
    x = jnp.dot(text_emb, w1_ref[...], preferred_element_type=jnp.float32) + b1_ref[...]
    x = jnp.maximum(x, 0.0)                                             # [B, 256]

    # ---- all 4 heads in ONE lane-dense matmul: [B, 512] ----
    logits = jnp.dot(x, wh_ref[...], preferred_element_type=jnp.float32) + bh_ref[...]

    # per-head log_softmax on 128-lane-aligned tiles; padded lanes masked to -inf
    lane = jax.lax.broadcasted_iota(jnp.int32, (1, HEAD_PAD), 1)        # [1, 128]
    parts = []
    for h, width in enumerate(HEAD_WIDTHS):
        tile  = logits[:, h * HEAD_PAD:(h + 1) * HEAD_PAD]              # aligned lane slice
        valid = lane < width
        z     = jnp.where(valid, tile, -jnp.inf)
        m     = jnp.max(z, axis=-1, keepdims=True)
        s_    = z - m
        lse   = jnp.log(jnp.sum(jnp.exp(s_), axis=-1, keepdims=True))
        parts.append(jnp.where(valid, s_ - lse, 0.0))
    # single unmasked, lane-dense store of the whole [B, 512] slab
    out_ref[...] = jnp.concatenate(parts, axis=-1).astype(out_ref.dtype)


def multimodal_forward(instructions, packed):
    """Full forward pass: token ids [B, S] int32 -> 4 log-prob tensors."""
    B = instructions.shape[0]

    flops = 2 * B * (VOCAB_PAD * TOTAL_EMB_SIZE
                     + TOTAL_EMB_SIZE * HIDDEN_PAD
                     + HIDDEN_PAD * OUT_PAD)
    transcendentals = B * (OUT_PAD + len(HEAD_WIDTHS))
    bytes_accessed = 4 * (B * SEQ_LEN
                          + VOCAB_PAD * TOTAL_EMB_SIZE
                          + TOTAL_EMB_SIZE * HIDDEN_PAD + HIDDEN_PAD
                          + HIDDEN_PAD * OUT_PAD + OUT_PAD
                          + B * OUT_PAD)

    vmem_spec = pl.BlockSpec(memory_space=pltpu.MemorySpace.VMEM)
    out_slab = pl.pallas_call(
        _fused_kernel,
        out_shape=jax.ShapeDtypeStruct((B, OUT_PAD), jnp.float32),
        in_specs=[vmem_spec] * 6,
        out_specs=vmem_spec,
        compiler_params=pltpu.CompilerParams(vmem_limit_bytes=8 * 1024 * 1024),
        cost_estimate=pl.CostEstimate(flops=flops,
                                      transcendentals=transcendentals,
                                      bytes_accessed=bytes_accessed),
    )(instructions, packed["table"], packed["w1"], packed["b1"],
      packed["wh"], packed["bh"])

    # 128-lane-aligned slices -> the 4 heads
    lm = out_slab[:, 0:N_LANDMARK]
    t1 = out_slab[:, HEAD_PAD:HEAD_PAD + NUM_BUCKETS]
    t2 = out_slab[:, 2 * HEAD_PAD:2 * HEAD_PAD + NUM_BUCKETS]
    rr = out_slab[:, 3 * HEAD_PAD:3 * HEAD_PAD + N_R]
    return lm, t1, t2, rr


# ---------------------------------------------------------------------------
# Deterministic parameter init (PyTorch nn.Linear style: U(-1/sqrt(in), 1/sqrt(in)))
# ---------------------------------------------------------------------------
def _linear_params(key, fan_in, fan_out):
    kw, kb = jax.random.split(key)
    bound = 1.0 / jnp.sqrt(float(fan_in))
    w = jax.random.uniform(kw, (fan_in, fan_out), jnp.float32, -bound, bound)
    b = jax.random.uniform(kb, (1, fan_out),      jnp.float32, -bound, bound)
    return w, b


def init_params(key):
    keys = jax.random.split(key, 6)
    params = {}
    params["w1"],  params["b1"]  = _linear_params(keys[0], TOTAL_EMB_SIZE, HIDDEN_DIM)
    params["wl"],  params["bl"]  = _linear_params(keys[1], HIDDEN_DIM, N_LANDMARK)
    params["wt1"], params["bt1"] = _linear_params(keys[2], HIDDEN_DIM, NUM_BUCKETS)
    params["wt2"], params["bt2"] = _linear_params(keys[3], HIDDEN_DIM, NUM_BUCKETS)
    params["wr"],  params["br"]  = _linear_params(keys[4], HIDDEN_DIM, N_R)
    # synthetic text_module: embedding table [VOCAB, TOTAL_EMB_SIZE]
    params["emb_table"] = jax.random.normal(keys[5], (VOCAB, TOTAL_EMB_SIZE), jnp.float32)
    return params


def pack_params(params):
    """One-time packing of weights into padded / fused, lane-dense layouts."""
    w1 = jnp.zeros((TOTAL_EMB_SIZE, HIDDEN_PAD), jnp.float32)
    w1 = w1.at[:, :HIDDEN_DIM].set(params["w1"])
    b1 = jnp.zeros((1, HIDDEN_PAD), jnp.float32).at[:, :HIDDEN_DIM].set(params["b1"])

    wh = jnp.zeros((HIDDEN_PAD, OUT_PAD), jnp.float32)
    bh = jnp.zeros((1, OUT_PAD), jnp.float32)
    head_keys = (("wl", "bl", N_LANDMARK), ("wt1", "bt1", NUM_BUCKETS),
                 ("wt2", "bt2", NUM_BUCKETS), ("wr", "br", N_R))
    for h, (wk, bk, width) in enumerate(head_keys):
        col = h * HEAD_PAD
        wh = wh.at[:HIDDEN_DIM, col:col + width].set(params[wk])
        bh = bh.at[:, col:col + width].set(params[bk])

    table = jnp.zeros((VOCAB_PAD, TOTAL_EMB_SIZE), jnp.float32)
    table = table.at[:VOCAB, :].set(params["emb_table"])
    return {"table": table, "w1": w1, "b1": b1, "wh": wh, "bh": bh}


# ---------------------------------------------------------------------------
# Pure-JAX reference (unpadded params, gather-based text module)
# ---------------------------------------------------------------------------
def _reference(instructions, p):
    text_emb = jnp.mean(p["emb_table"][instructions], axis=1)        # [B, 256]
    x = jnp.maximum(text_emb @ p["w1"] + p["b1"], 0.0)

    def head(w, b):
        return jax.nn.log_softmax(x @ w + b, axis=-1)

    return (head(p["wl"], p["bl"]), head(p["wt1"], p["bt1"]),
            head(p["wt2"], p["bt2"]), head(p["wr"], p["br"]))


if __name__ == "__main__":
    key = jax.random.PRNGKey(0)
    k_param, k_tok = jax.random.split(key)

    params = init_params(k_param)
    packed = pack_params(params)
    instructions = jax.random.randint(k_tok, (BATCH, SEQ_LEN), 0, VOCAB, dtype=jnp.int32)

    outs = multimodal_forward(instructions, packed)
    outs = jax.block_until_ready(outs)

    refs = _reference(instructions, params)
    for o, r in zip(outs, refs):
        assert o.shape == r.shape and o.dtype == jnp.float32
        assert jnp.allclose(o, r, atol=1e-4, rtol=1e-4), "mismatch vs reference"

    print("KERNEL_OK")
</pallas_src>

<mosaic_0001>
module attributes {stable_mosaic.version = 11 : i64} {
  func.func @_fused_kernel(%arg0: memref<8x8xi32, #tpu.memory_space<vmem>>, %arg1: memref<64x256xf32, #tpu.memory_space<vmem>>, %arg2: memref<256x256xf32, #tpu.memory_space<vmem>>, %arg3: memref<1x256xf32, #tpu.memory_space<vmem>>, %arg4: memref<256x512xf32, #tpu.memory_space<vmem>>, %arg5: memref<1x512xf32, #tpu.memory_space<vmem>>, %arg6: memref<8x512xf32, #tpu.memory_space<vmem>>) attributes {dimension_semantics = [], scalar_prefetch = 0 : i64, scratch_operands = 0 : i64, tpu.core_type = #tpu.core_type<tc>} {
    %c0 = arith.constant 0 : index
    %c0_0 = arith.constant 0 : index
    %0 = vector.load %arg0[%c0, %c0_0] : memref<8x8xi32, #tpu.memory_space<vmem>>, vector<8x8xi32>
    %1 = tpu.iota {dimensions = array<i32: 1>} : vector<1x64xi32>
    %cst = arith.constant 0.000000e+00 : f32
    %2 = vector.broadcast %cst : f32 to vector<8x64xf32>
    %3 = vector.extract_strided_slice %0 {offsets = [0, 0], sizes = [8, 1], strides = [1, 1]} : vector<8x8xi32> to vector<8x1xi32>
    %4 = vector.broadcast %3 : vector<8x1xi32> to vector<8x64xi32>
    %5 = vector.broadcast %1 : vector<1x64xi32> to vector<8x64xi32>
    %6 = arith.cmpi eq, %4, %5 : vector<8x64xi32>
    %7 = arith.extui %6 : vector<8x64xi1> to vector<8x64xi32>
    %8 = arith.sitofp %7 : vector<8x64xi32> to vector<8x64xf32>
    %9 = arith.addf %2, %8 : vector<8x64xf32>
    %10 = vector.extract_strided_slice %0 {offsets = [0, 1], sizes = [8, 1], strides = [1, 1]} : vector<8x8xi32> to vector<8x1xi32>
    %11 = vector.broadcast %10 : vector<8x1xi32> to vector<8x64xi32>
    %12 = vector.broadcast %1 : vector<1x64xi32> to vector<8x64xi32>
    %13 = arith.cmpi eq, %11, %12 : vector<8x64xi32>
    %14 = arith.extui %13 : vector<8x64xi1> to vector<8x64xi32>
    %15 = arith.sitofp %14 : vector<8x64xi32> to vector<8x64xf32>
    %16 = arith.addf %9, %15 : vector<8x64xf32>
    %17 = vector.extract_strided_slice %0 {offsets = [0, 2], sizes = [8, 1], strides = [1, 1]} : vector<8x8xi32> to vector<8x1xi32>
    %18 = vector.broadcast %17 : vector<8x1xi32> to vector<8x64xi32>
    %19 = vector.broadcast %1 : vector<1x64xi32> to vector<8x64xi32>
    %20 = arith.cmpi eq, %18, %19 : vector<8x64xi32>
    %21 = arith.extui %20 : vector<8x64xi1> to vector<8x64xi32>
    %22 = arith.sitofp %21 : vector<8x64xi32> to vector<8x64xf32>
    %23 = arith.addf %16, %22 : vector<8x64xf32>
    %24 = vector.extract_strided_slice %0 {offsets = [0, 3], sizes = [8, 1], strides = [1, 1]} : vector<8x8xi32> to vector<8x1xi32>
    %25 = vector.broadcast %24 : vector<8x1xi32> to vector<8x64xi32>
    %26 = vector.broadcast %1 : vector<1x64xi32> to vector<8x64xi32>
    %27 = arith.cmpi eq, %25, %26 : vector<8x64xi32>
    %28 = arith.extui %27 : vector<8x64xi1> to vector<8x64xi32>
    %29 = arith.sitofp %28 : vector<8x64xi32> to vector<8x64xf32>
    %30 = arith.addf %23, %29 : vector<8x64xf32>
    %31 = vector.extract_strided_slice %0 {offsets = [0, 4], sizes = [8, 1], strides = [1, 1]} : vector<8x8xi32> to vector<8x1xi32>
    %32 = vector.broadcast %31 : vector<8x1xi32> to vector<8x64xi32>
    %33 = vector.broadcast %1 : vector<1x64xi32> to vector<8x64xi32>
    %34 = arith.cmpi eq, %32, %33 : vector<8x64xi32>
    %35 = arith.extui %34 : vector<8x64xi1> to vector<8x64xi32>
    %36 = arith.sitofp %35 : vector<8x64xi32> to vector<8x64xf32>
    %37 = arith.addf %30, %36 : vector<8x64xf32>
    %38 = vector.extract_strided_slice %0 {offsets = [0, 5], sizes = [8, 1], strides = [1, 1]} : vector<8x8xi32> to vector<8x1xi32>
    %39 = vector.broadcast %38 : vector<8x1xi32> to vector<8x64xi32>
    %40 = vector.broadcast %1 : vector<1x64xi32> to vector<8x64xi32>
    %41 = arith.cmpi eq, %39, %40 : vector<8x64xi32>
    %42 = arith.extui %41 : vector<8x64xi1> to vector<8x64xi32>
    %43 = arith.sitofp %42 : vector<8x64xi32> to vector<8x64xf32>
    %44 = arith.addf %37, %43 : vector<8x64xf32>
    %45 = vector.extract_strided_slice %0 {offsets = [0, 6], sizes = [8, 1], strides = [1, 1]} : vector<8x8xi32> to vector<8x1xi32>
    %46 = vector.broadcast %45 : vector<8x1xi32> to vector<8x64xi32>
    %47 = vector.broadcast %1 : vector<1x64xi32> to vector<8x64xi32>
    %48 = arith.cmpi eq, %46, %47 : vector<8x64xi32>
    %49 = arith.extui %48 : vector<8x64xi1> to vector<8x64xi32>
    %50 = arith.sitofp %49 : vector<8x64xi32> to vector<8x64xf32>
    %51 = arith.addf %44, %50 : vector<8x64xf32>
    %52 = vector.extract_strided_slice %0 {offsets = [0, 7], sizes = [8, 1], strides = [1, 1]} : vector<8x8xi32> to vector<8x1xi32>
    %53 = vector.broadcast %52 : vector<8x1xi32> to vector<8x64xi32>
    %54 = vector.broadcast %1 : vector<1x64xi32> to vector<8x64xi32>
    %55 = arith.cmpi eq, %53, %54 : vector<8x64xi32>
    %56 = arith.extui %55 : vector<8x64xi1> to vector<8x64xi32>
    %57 = arith.sitofp %56 : vector<8x64xi32> to vector<8x64xf32>
    %58 = arith.addf %51, %57 : vector<8x64xf32>
    %c0_1 = arith.constant 0 : index
    %c0_2 = arith.constant 0 : index
    %59 = vector.load %arg1[%c0_1, %c0_2] : memref<64x256xf32, #tpu.memory_space<vmem>>, vector<64x256xf32>
    %cst_3 = arith.constant dense<0.000000e+00> : vector<8x256xf32>
    %60 = tpu.matmul %58, %59, %cst_3 {dimension_numbers = #tpu.dot_dimension_numbers<[1], [0], [0], [1], [0, 0, 1, 1], [], []>} : vector<8x64xf32>, vector<64x256xf32>, vector<8x256xf32> -> vector<8x256xf32>
    %cst_4 = arith.constant 1.250000e-01 : f32
    %61 = vector.broadcast %cst_4 : f32 to vector<8x256xf32>
    %62 = arith.mulf %60, %61 : vector<8x256xf32>
    %c0_5 = arith.constant 0 : index
    %c0_6 = arith.constant 0 : index
    %63 = vector.load %arg2[%c0_5, %c0_6] : memref<256x256xf32, #tpu.memory_space<vmem>>, vector<256x256xf32>
    %cst_7 = arith.constant dense<0.000000e+00> : vector<8x256xf32>
    %64 = tpu.matmul %62, %63, %cst_7 {dimension_numbers = #tpu.dot_dimension_numbers<[1], [0], [0], [1], [0, 0, 1, 1], [], []>} : vector<8x256xf32>, vector<256x256xf32>, vector<8x256xf32> -> vector<8x256xf32>
    %c0_8 = arith.constant 0 : index
    %c0_9 = arith.constant 0 : index
    %65 = vector.load %arg3[%c0_8, %c0_9] : memref<1x256xf32, #tpu.memory_space<vmem>>, vector<1x256xf32>
    %66 = vector.broadcast %65 : vector<1x256xf32> to vector<8x256xf32>
    %67 = arith.addf %64, %66 : vector<8x256xf32>
    %cst_10 = arith.constant 0.000000e+00 : f32
    %68 = vector.broadcast %cst_10 : f32 to vector<8x256xf32>
    %69 = arith.maximumf %67, %68 : vector<8x256xf32>
    %c0_11 = arith.constant 0 : index
    %c0_12 = arith.constant 0 : index
    %70 = vector.load %arg4[%c0_11, %c0_12] : memref<256x512xf32, #tpu.memory_space<vmem>>, vector<256x512xf32>
    %cst_13 = arith.constant dense<0.000000e+00> : vector<8x512xf32>
    %71 = tpu.matmul %69, %70, %cst_13 {dimension_numbers = #tpu.dot_dimension_numbers<[1], [0], [0], [1], [0, 0, 1, 1], [], []>} : vector<8x256xf32>, vector<256x512xf32>, vector<8x512xf32> -> vector<8x512xf32>
    %c0_14 = arith.constant 0 : index
    %c0_15 = arith.constant 0 : index
    %72 = vector.load %arg5[%c0_14, %c0_15] : memref<1x512xf32, #tpu.memory_space<vmem>>, vector<1x512xf32>
    %73 = vector.broadcast %72 : vector<1x512xf32> to vector<8x512xf32>
    %74 = arith.addf %71, %73 : vector<8x512xf32>
    %75 = tpu.iota {dimensions = array<i32: 1>} : vector<1x128xi32>
    %76 = vector.extract_strided_slice %74 {offsets = [0, 0], sizes = [8, 128], strides = [1, 1]} : vector<8x512xf32> to vector<8x128xf32>
    %c67_i32 = arith.constant 67 : i32
    %77 = vector.broadcast %c67_i32 : i32 to vector<1x128xi32>
    %78 = arith.cmpi slt, %75, %77 : vector<1x128xi32>
    %cst_16 = arith.constant 0xFF800000 : f32
    %79 = vector.shape_cast %78 : vector<1x128xi1> to vector<1x128xi1>
    %80 = vector.broadcast %79 : vector<1x128xi1> to vector<8x128xi1>
    %81 = vector.broadcast %cst_16 : f32 to vector<8x128xf32>
    %82 = arith.select %80, %76, %81 : vector<8x128xi1>, vector<8x128xf32>
    %cst_17 = arith.constant dense<0xFF800000> : vector<8xf32>
    %83 = vector.multi_reduction <maximumf>, %82, %cst_17 [1] : vector<8x128xf32> to vector<8xf32>
    %84 = vector.shape_cast %83 : vector<8xf32> to vector<8x1xf32>
    %85 = vector.broadcast %84 : vector<8x1xf32> to vector<8x128xf32>
    %86 = arith.subf %82, %85 : vector<8x128xf32>
    %87 = math.exp %86 : vector<8x128xf32>
    %cst_18 = arith.constant dense<0.000000e+00> : vector<8xf32>
    %88 = vector.multi_reduction <add>, %87, %cst_18 [1] : vector<8x128xf32> to vector<8xf32>
    %89 = vector.shape_cast %88 : vector<8xf32> to vector<8x1xf32>
    %90 = math.log %89 : vector<8x1xf32>
    %91 = vector.broadcast %90 : vector<8x1xf32> to vector<8x128xf32>
    %92 = arith.subf %86, %91 : vector<8x128xf32>
    %cst_19 = arith.constant 0.000000e+00 : f32
    %93 = vector.shape_cast %78 : vector<1x128xi1> to vector<1x128xi1>
    %94 = vector.broadcast %93 : vector<1x128xi1> to vector<8x128xi1>
    %95 = vector.broadcast %cst_19 : f32 to vector<8x128xf32>
    %96 = arith.select %94, %92, %95 : vector<8x128xi1>, vector<8x128xf32>
    %97 = vector.extract_strided_slice %74 {offsets = [0, 128], sizes = [8, 128], strides = [1, 1]} : vector<8x512xf32> to vector<8x128xf32>
    %c24_i32 = arith.constant 24 : i32
    %98 = vector.broadcast %c24_i32 : i32 to vector<1x128xi32>
    %99 = arith.cmpi slt, %75, %98 : vector<1x128xi32>
    %cst_20 = arith.constant 0xFF800000 : f32
    %100 = vector.shape_cast %99 : vector<1x128xi1> to vector<1x128xi1>
    %101 = vector.broadcast %100 : vector<1x128xi1> to vector<8x128xi1>
    %102 = vector.broadcast %cst_20 : f32 to vector<8x128xf32>
    %103 = arith.select %101, %97, %102 : vector<8x128xi1>, vector<8x128xf32>
    %cst_21 = arith.constant dense<0xFF800000> : vector<8xf32>
    %104 = vector.multi_reduction <maximumf>, %103, %cst_21 [1] : vector<8x128xf32> to vector<8xf32>
    %105 = vector.shape_cast %104 : vector<8xf32> to vector<8x1xf32>
    %106 = vector.broadcast %105 : vector<8x1xf32> to vector<8x128xf32>
    %107 = arith.subf %103, %106 : vector<8x128xf32>
    %108 = math.exp %107 : vector<8x128xf32>
    %cst_22 = arith.constant dense<0.000000e+00> : vector<8xf32>
    %109 = vector.multi_reduction <add>, %108, %cst_22 [1] : vector<8x128xf32> to vector<8xf32>
    %110 = vector.shape_cast %109 : vector<8xf32> to vector<8x1xf32>
    %111 = math.log %110 : vector<8x1xf32>
    %112 = vector.broadcast %111 : vector<8x1xf32> to vector<8x128xf32>
    %113 = arith.subf %107, %112 : vector<8x128xf32>
    %cst_23 = arith.constant 0.000000e+00 : f32
    %114 = vector.shape_cast %99 : vector<1x128xi1> to vector<1x128xi1>
    %115 = vector.broadcast %114 : vector<1x128xi1> to vector<8x128xi1>
    %116 = vector.broadcast %cst_23 : f32 to vector<8x128xf32>
    %117 = arith.select %115, %113, %116 : vector<8x128xi1>, vector<8x128xf32>
    %118 = vector.extract_strided_slice %74 {offsets = [0, 256], sizes = [8, 128], strides = [1, 1]} : vector<8x512xf32> to vector<8x128xf32>
    %c24_i32_24 = arith.constant 24 : i32
    %119 = vector.broadcast %c24_i32_24 : i32 to vector<1x128xi32>
    %120 = arith.cmpi slt, %75, %119 : vector<1x128xi32>
    %cst_25 = arith.constant 0xFF800000 : f32
    %121 = vector.shape_cast %120 : vector<1x128xi1> to vector<1x128xi1>
    %122 = vector.broadcast %121 : vector<1x128xi1> to vector<8x128xi1>
    %123 = vector.broadcast %cst_25 : f32 to vector<8x128xf32>
    %124 = arith.select %122, %118, %123 : vector<8x128xi1>, vector<8x128xf32>
    %cst_26 = arith.constant dense<0xFF800000> : vector<8xf32>
    %125 = vector.multi_reduction <maximumf>, %124, %cst_26 [1] : vector<8x128xf32> to vector<8xf32>
    %126 = vector.shape_cast %125 : vector<8xf32> to vector<8x1xf32>
    %127 = vector.broadcast %126 : vector<8x1xf32> to vector<8x128xf32>
    %128 = arith.subf %124, %127 : vector<8x128xf32>
    %129 = math.exp %128 : vector<8x128xf32>
    %cst_27 = arith.constant dense<0.000000e+00> : vector<8xf32>
    %130 = vector.multi_reduction <add>, %129, %cst_27 [1] : vector<8x128xf32> to vector<8xf32>
    %131 = vector.shape_cast %130 : vector<8xf32> to vector<8x1xf32>
    %132 = math.log %131 : vector<8x1xf32>
    %133 = vector.broadcast %132 : vector<8x1xf32> to vector<8x128xf32>
    %134 = arith.subf %128, %133 : vector<8x128xf32>
    %cst_28 = arith.constant 0.000000e+00 : f32
    %135 = vector.shape_cast %120 : vector<1x128xi1> to vector<1x128xi1>
    %136 = vector.broadcast %135 : vector<1x128xi1> to vector<8x128xi1>
    %137 = vector.broadcast %cst_28 : f32 to vector<8x128xf32>
    %138 = arith.select %136, %134, %137 : vector<8x128xi1>, vector<8x128xf32>
    %139 = vector.extract_strided_slice %74 {offsets = [0, 384], sizes = [8, 128], strides = [1, 1]} : vector<8x512xf32> to vector<8x128xf32>
    %c15_i32 = arith.constant 15 : i32
    %140 = vector.broadcast %c15_i32 : i32 to vector<1x128xi32>
    %141 = arith.cmpi slt, %75, %140 : vector<1x128xi32>
    %cst_29 = arith.constant 0xFF800000 : f32
    %142 = vector.shape_cast %141 : vector<1x128xi1> to vector<1x128xi1>
    %143 = vector.broadcast %142 : vector<1x128xi1> to vector<8x128xi1>
    %144 = vector.broadcast %cst_29 : f32 to vector<8x128xf32>
    %145 = arith.select %143, %139, %144 : vector<8x128xi1>, vector<8x128xf32>
    %cst_30 = arith.constant dense<0xFF800000> : vector<8xf32>
    %146 = vector.multi_reduction <maximumf>, %145, %cst_30 [1] : vector<8x128xf32> to vector<8xf32>
    %147 = vector.shape_cast %146 : vector<8xf32> to vector<8x1xf32>
    %148 = vector.broadcast %147 : vector<8x1xf32> to vector<8x128xf32>
    %149 = arith.subf %145, %148 : vector<8x128xf32>
    %150 = math.exp %149 : vector<8x128xf32>
    %cst_31 = arith.constant dense<0.000000e+00> : vector<8xf32>
    %151 = vector.multi_reduction <add>, %150, %cst_31 [1] : vector<8x128xf32> to vector<8xf32>
    %152 = vector.shape_cast %151 : vector<8xf32> to vector<8x1xf32>
    %153 = math.log %152 : vector<8x1xf32>
    %154 = vector.broadcast %153 : vector<8x1xf32> to vector<8x128xf32>
    %155 = arith.subf %149, %154 : vector<8x128xf32>
    %cst_32 = arith.constant 0.000000e+00 : f32
    %156 = vector.shape_cast %141 : vector<1x128xi1> to vector<1x128xi1>
    %157 = vector.broadcast %156 : vector<1x128xi1> to vector<8x128xi1>
    %158 = vector.broadcast %cst_32 : f32 to vector<8x128xf32>
    %159 = arith.select %157, %155, %158 : vector<8x128xi1>, vector<8x128xf32>
    %160 = tpu.concatenate %96, %117, %138, %159 in 1 : vector<8x128xf32>, vector<8x128xf32>, vector<8x128xf32>, vector<8x128xf32> -> vector<8x512xf32>
    %c0_33 = arith.constant 0 : index
    %c0_34 = arith.constant 0 : index
    %161 = vector.load %arg6[%c0_33, %c0_34] : memref<8x512xf32, #tpu.memory_space<vmem>>, vector<8x512xf32>
    tpu.vector_store %arg6[%c0_33, %c0_34], %160 {strides = array<i32>} : memref<8x512xf32, #tpu.memory_space<vmem>>, vector<8x512xf32>,
    return
  }
}

</mosaic_0001>

<bundles_post_ra>
// kernel: tpu_custom_call.1
= control target key start
LH: loop header
LB: loop body
LE: loop exit
PB: predicated region body
PF: predicated region fallthrough
CT: control target
= control target key end

     0   :  { %11 = vsyncpa [#allocation3], 0  ;;  %s1081_s0 = inlined_call_operand.hbm [shape: s32[8,8], index: 0, kind: input, shape index: {}]   ;;  %s1082_s1 = inlined_call_operand.hbm [shape: f32[64,256], index: 1, kind: input, shape index: {}]   ;;  %s1083_s2 = inlined_call_operand.hbm [shape: f32[256,256], index: 2, kind: input, shape index: {}]   ;;  %s1084_s3 = inlined_call_operand.hbm [shape: f32[1,256], index: 3, kind: input, shape index: {}]   ;;  %s1085_s4 = inlined_call_operand.hbm [shape: f32[256,512], index: 4, kind: input, shape index: {}]   ;;  %s1086_s5 = inlined_call_operand.vmem [shape: f32[1,512], index: 5, kind: input, shape index: {}]   ;;  %s1087_s6 = inlined_call_operand.hbm [shape: f32[8,512], index: 6, kind: output, shape index: {}]  }
   0x1   :  { %12 = vsyncpa [#allocation6], 0 }
   0x2   :  { %13 = vsyncpa [#allocation9], 0  ;;  %s30_s23 = sshll.u32 %s1082_s1, 4  ;;  %s31_s23 = int_to_ptr.hbm [resolvable:$true] %s30_s23 }
   0x3   :  { %14 = vsyncpa [#allocation4], 0  ;;  %s955_s24 = smov [#allocation5]   ;;  %s57_s28 = sshll.u32 %s1084_s3, 4  ;;  %s58_s28 = int_to_ptr.hbm [resolvable:$true] %s57_s28 }
   0x4   :  { %s32_s25 = sshll.u32 %s955_s24, 4  ;;  %s956_s29 = smov 256   ;;  %s33_s25 = int_to_ptr.vmem [resolvable:$true] %s32_s25 }
   0x5   :  { %s957_s30 = smov 16   ;;  %s958_s7 = smov [#allocation8]  }
   0x6   :  { %38 = dma.hbm_to_vmem [thread:$0]  %s31_s23, 2048, %s33_s25, [#allocation6], %s956_s29, %s956_s29, %s957_s30  }
   0x7   :  { %s59_s8 = sshll.u32 %s958_s7, 4  ;;  %s20_s11 = sshll.u32 %s1081_s0, 4  ;;  %s60_s8 = int_to_ptr.vmem [resolvable:$true] %s59_s8  ;;  %s21_s11 = int_to_ptr.hbm [resolvable:$true] %s20_s11 }
   0x8   :  { %62 = dma.hbm_to_vmem [thread:$0]  %s58_s28, 32, %s60_s8, [#allocation9]  }
   0x9   :  { %s43_s13 = sshll.u32 %s1083_s2, 4  ;;  %s959_s14 = smov [#allocation2]   ;;  %s44_s13 = int_to_ptr.hbm [resolvable:$true] %s43_s13 }
   0xa   :  { %s22_s15 = sshll.u32 %s959_s14, 4  ;;  %s960_s3 = smov [#allocation7]   ;;  %s23_s15 = int_to_ptr.vmem [resolvable:$true] %s22_s15 }
   0xb   :  { %25 = dma.hbm_to_vmem [thread:$0]  %s21_s11, 128, %s23_s15, [#allocation3]  }
   0xc   :  { %s45_s16 = sshll.u32 %s960_s3, 4  ;;  %s67_s19 = sshll.u32 %s1085_s4, 4  ;;  %s46_s16 = int_to_ptr.vmem [resolvable:$true] %s45_s16  ;;  %s68_s19 = int_to_ptr.hbm [resolvable:$true] %s67_s19 }
   0xd   :  { %51 = dma.hbm_to_vmem [thread:$0]  %s44_s13, 8192, %s46_s16, [#allocation6], %s956_s29, %s956_s29, %s957_s30  }
   0xe   :  { %s961_s0 = smov [#allocation10]   ;;  %s962_s21 = smov 512  }
   0xf   :  { %s69_s20 = sshll.u32 %s961_s0, 4  ;;  %s963_s22 = smov 32   ;;  %s70_s20 = int_to_ptr.vmem [resolvable:$true] %s69_s20 }
  0x10   :  { %75 = dma.hbm_to_vmem [thread:$0]  %s68_s19, 16384, %s70_s20, [#allocation9], %s962_s21, %s962_s21, %s963_s22  }
  0x11   :  { %947 = dma.done.wait [#allocation3], 128  }
  0x12   :  { %948 = vsyncadd [#allocation3], 4294967168 }
  0x13   :  { %949 = dma.done.wait [#allocation6], 10240  }
  0x14   :  { %950 = vsyncadd [#allocation6], 4294957056 }
  0x15   :  { %951 = dma.done.wait [#allocation9], 16416  }
  0x16   :  { %952 = vsyncadd [#allocation9], 4294950880  ;;  %v964_v0 = vmov 0   ;;  %v965_v1 = vmov 2   ;;  %v966_v2 = vmov 4   ;;  %v98_v3 = vld [vmem:[#allocation2] sm:$0xff]  ;;  %v99_v42 = vlaneseq }
  0x17   :  { %778 = vset.pattern.permute.xlu0 %v964_v0  ;;  %780 = vset.pattern.permute.xlu1 %v965_v1  ;;  %v967_v4 = vmov 1   ;;  %v968_v5 = vmov 3   ;;  %v969_v6 = vmov 5   ;;  %v970_v7 = vmov 6   ;;  %v171_v9 = vld [vmem:[#allocation5 + $0x70] sm:$0xff]  ;;  %v172_v10 = vld [vmem:[#allocation5 + $0x78] sm:$0xff] }
  0x18   :  { %782 = vset.pattern.permute.xlu2 %v966_v2  ;;  %102 = vperm.xlu0 %778, %v98_v3   ;;  %v971_v8 = vmov 7   ;;  %v169_v11 = vld [vmem:[#allocation5 + $0x60] sm:$0xff]  ;;  %v170_v12 = vld [vmem:[#allocation5 + $0x68] sm:$0xff]  ;;  %v167_v13 = vld [vmem:[#allocation5 + $0x50] sm:$0xff]  ;;  %v1028_v53 = vand.u32 127, %v99_v42  ;;  %vm173_vm8 = vcmask 523264  }
  0x19   :  { %116 = vperm.xlu1 %780, %v98_v3   ;;  %130 = vperm.xlu2 %782, %v98_v3   ;;  %v168_v14 = vld [vmem:[#allocation5 + $0x58] sm:$0xff]  ;;  %v165_v15 = vld [vmem:[#allocation5 + $0x40] sm:$0xff]  ;;  %v166_v16 = vld [vmem:[#allocation5 + $0x48] sm:$0xff]  ;;  %s737_s26 = sshll.u32 %s1087_s6, 4  ;;  %s738_s26 = int_to_ptr.hbm [resolvable:$true] %s737_s26 }
  0x1a   :  { %185 = vmatpush.msra.mxu0 %v171_v9  ;;  %205 = vmatpush.msra.mxu1 %v172_v10  ;;  %v163_v17 = vld [vmem:[#allocation5 + $0x30] sm:$0xff]  ;;  %v164_v18 = vld [vmem:[#allocation5 + $0x38] sm:$0xff]  ;;  %v161_v19 = vld [vmem:[#allocation5 + $0x20] sm:$0xff]  ;;  %vm684_vm9 = vcmp.lt.s32.totalorder %v1028_v53, 24  ;;  %vm669_vm10 = vcmp.lt.s32.totalorder %v1028_v53, 67  ;;  %vm711_vm11 = vcmp.lt.s32.totalorder %v1028_v53, 15 }
  0x1b   :  { %v162_v20 = vld [vmem:[#allocation5 + $0x28] sm:$0xff]  ;;  %v159_v21 = vld [vmem:[#allocation5 + $0x10] sm:$0xff]  ;;  %v160_v22 = vld [vmem:[#allocation5 + $0x18] sm:$0xff] }
  0x1c   :  { %186 = vmatpush.msra.mxu0 %v169_v11  ;;  %206 = vmatpush.msra.mxu1 %v170_v12  ;;  %v157_v23 = vld [vmem:[#allocation5] sm:$0xff]  ;;  %v158_v24 = vld [vmem:[#allocation5 + $0x8] sm:$0xff]  ;;  %v249_v25 = vld [vmem:[#allocation7 + $0xf0] sm:$0xff] }
  0x1d   :  { %v281_v26 = vld [vmem:[#allocation7 + $0x1f0] sm:$0xff]  ;;  %v250_v27 = vld [vmem:[#allocation7 + $0xf8] sm:$0xff]  ;;  %289 = vmatpush.msra.mxu2 %v249_v25  ;;  %v247_v30 = vld [vmem:[#allocation7 + $0xe0] sm:$0xff] }
  0x1e   :  { %187 = vmatpush.msra.mxu0 %v167_v13  ;;  %207 = vmatpush.msra.mxu1 %v168_v14  ;;  %v282_v29 = vld [vmem:[#allocation7 + $0x1f8] sm:$0xff]  ;;  %v279_v31 = vld [vmem:[#allocation7 + $0x1e0] sm:$0xff]  ;;  %v248_v32 = vld [vmem:[#allocation7 + $0xe8] sm:$0xff] }
  0x1f   :  { %309 = vmatpush.msra.mxu3 %v281_v26  ;;  %v280_v33 = vld [vmem:[#allocation7 + $0x1e8] sm:$0xff]  ;;  %v245_v34 = vld [vmem:[#allocation7 + $0xd0] sm:$0xff]  ;;  %290 = vmatpush.msra.mxu2 %v247_v30  ;;  %v246_v36 = vld [vmem:[#allocation7 + $0xd8] sm:$0xff] }
  0x20   :  { %779 = vset.pattern.permute.xlu0 %v967_v4  ;;  %188 = vmatpush.msra.mxu0 %v165_v15  ;;  %v277_v35 = vld [vmem:[#allocation7 + $0x1d0] sm:$0xff]  ;;  %v278_v37 = vld [vmem:[#allocation7 + $0x1d8] sm:$0xff]  ;;  %v243_v38 = vld [vmem:[#allocation7 + $0xc0] sm:$0xff] }
  0x21   :  { %781 = vset.pattern.permute.xlu1 %v968_v5  ;;  %109 = vperm.xlu0 %779, %v98_v3   ;;  %v275_v39 = vld [vmem:[#allocation7 + $0x1c0] sm:$0xff]  ;;  %v244_v40 = vld [vmem:[#allocation7 + $0xc8] sm:$0xff]  ;;  %v241_v45 = vld [vmem:[#allocation7 + $0xb0] sm:$0xff] }
  0x22   :  { %123 = vperm.xlu1 %781, %v98_v3   ;;  %783 = vset.pattern.permute.xlu2 %v969_v6  ;;  %v276_v41 = vld [vmem:[#allocation7 + $0x1c8] sm:$0xff]  ;;  %v273_v46 = vld [vmem:[#allocation7 + $0x1b0] sm:$0xff]  ;;  %v242_v47 = vld [vmem:[#allocation7 + $0xb8] sm:$0xff] }
  0x23   :  { %137 = vperm.xlu2 %783, %v98_v3   ;;  %208 = vmatpush.msra.mxu1 %v166_v16  ;;  %v274_v48 = vld [vmem:[#allocation7 + $0x1b8] sm:$0xff]  ;;  %v239_v49 = vld [vmem:[#allocation7 + $0xa0] sm:$0xff]  ;;  %v240_v51 = vld [vmem:[#allocation7 + $0xa8] sm:$0xff] }
  0x24   :  { %189 = vmatpush.msra.mxu0 %v163_v17  ;;  %310 = vmatpush.msra.mxu3 %v279_v31  ;;  %v271_v50 = vld [vmem:[#allocation7 + $0x1a0] sm:$0xff]  ;;  %v272_v52 = vld [vmem:[#allocation7 + $0x1a8] sm:$0xff]  ;;  %v237_v54 = vld [vmem:[#allocation7 + $0x90] sm:$0xff] }
  0x25   :  { %209 = vmatpush.msra.mxu1 %v164_v18  ;;  %291 = vmatpush.msra.mxu2 %v245_v34  ;;  %v269_v55 = vld [vmem:[#allocation7 + $0x190] sm:$0xff]  ;;  %v238_v57 = vld [vmem:[#allocation7 + $0x98] sm:$0xff]  ;;  %v235_v59 = vld [vmem:[#allocation7 + $0x80] sm:$0xff] }
  0x26   :  { %190 = vmatpush.msra.mxu0 %v161_v19  ;;  %311 = vmatpush.msra.mxu3 %v277_v35  ;;  %v270_v58 = vld [vmem:[#allocation7 + $0x198] sm:$0xff]  ;;  %v267_v60 = vld [vmem:[#allocation7 + $0x180] sm:$0xff]  ;;  %v236_v61 = vld [vmem:[#allocation7 + $0x88] sm:$0xff] }
  0x27   :  { %210 = vmatpush.msra.mxu1 %v162_v20  ;;  %292 = vmatpush.msra.mxu2 %v243_v38  ;;  %v268_v62 = vld [vmem:[#allocation7 + $0x188] sm:$0xff]  ;;  %v233_v63 = vld [vmem:[#allocation7 + $0x70] sm:$0xff]  ;;  %v266_v4 = vld [vmem:[#allocation7 + $0x178] sm:$0xff] }
  0x28   :  { %191 = vmatpush.msra.mxu0 %v159_v21  ;;  %312 = vmatpush.msra.mxu3 %v275_v39  ;;  %v265_v0 = vld [vmem:[#allocation7 + $0x170] sm:$0xff]  ;;  %v231_v5 = vld [vmem:[#allocation7 + $0x60] sm:$0xff]  ;;  %v232_v10 = vld [vmem:[#allocation7 + $0x68] sm:$0xff] }
  0x29   :  { %786 = vset.pattern.permute.xlu0 %v971_v8  ;;  %211 = vmatpush.msra.mxu1 %v160_v22  ;;  %v263_v6 = vld [vmem:[#allocation7 + $0x160] sm:$0xff]  ;;  %v264_v11 = vld [vmem:[#allocation7 + $0x168] sm:$0xff]  ;;  %v229_v13 = vld [vmem:[#allocation7 + $0x50] sm:$0xff] }
  0x2a   :  { %784 = vset.pattern.permute.xlu1 %v970_v7  ;;  %192 = vmatpush.msra.mxu0 %v157_v23  ;;  %v972_v7 = vmov 0.0   ;;  %v261_v14 = vld [vmem:[#allocation7 + $0x150] sm:$0xff]  ;;  %v230_v16 = vld [vmem:[#allocation7 + $0x58] sm:$0xff]  ;;  %v227_v19 = vld [vmem:[#allocation7 + $0x40] sm:$0xff] }
  0x2b   :  { %144 = vperm.xlu1 %784, %v98_v3   ;;  %785 = vset.pattern.permute.xlu2 %v971_v8  ;;  %v262_v17 = vld [vmem:[#allocation7 + $0x158] sm:$0xff]  ;;  %v259_v20 = vld [vmem:[#allocation7 + $0x140] sm:$0xff]  ;;  %v228_v23 = vld [vmem:[#allocation7 + $0x48] sm:$0xff] }
  0x2c   :  { %151 = vperm.xlu2 %785, %v98_v3   ;;  %212 = vmatpush.msra.mxu1 %v158_v24  ;;  %v234_v3 = vld [vmem:[#allocation7 + $0x78] sm:$0xff]  ;;  %v260_v24 = vld [vmem:[#allocation7 + $0x148] sm:$0xff]  ;;  %v225_v26 = vld [vmem:[#allocation7 + $0x30] sm:$0xff] }
  0x2d   :  { %329 = vmatpush.msrb.mxu0 %v250_v27  ;;  %293 = vmatpush.msra.mxu2 %v241_v45  ;;  %v257_v27 = vld [vmem:[#allocation7 + $0x130] sm:$0xff]  ;;  %v226_v30 = vld [vmem:[#allocation7 + $0x38] sm:$0xff]  ;;  %v223_v34 = vld [vmem:[#allocation7 + $0x20] sm:$0xff] }
  0x2e   :  { %349 = vmatpush.msrb.mxu1 %v282_v29  ;;  %313 = vmatpush.msra.mxu3 %v273_v46  ;;  %v258_v31 = vld [vmem:[#allocation7 + $0x138] sm:$0xff]  ;;  %v255_v35 = vld [vmem:[#allocation7 + $0x120] sm:$0xff] }
  0x2f   :  { %330 = vmatpush.msrb.mxu0 %v248_v32  ;;  %294 = vmatpush.msra.mxu2 %v239_v49  ;;  %v222_v45 = vld [vmem:[#allocation7 + $0x18] sm:$0xff]  ;;  %v220_v49 = vld [vmem:[#allocation7 + $0x8] sm:$0xff] }
  0x30   :  { %350 = vmatpush.msrb.mxu1 %v280_v33  ;;  %314 = vmatpush.msra.mxu3 %v271_v50  ;;  %v254_v46 = vld [vmem:[#allocation7 + $0x118] sm:$0xff]  ;;  %v252_v50 = vld [vmem:[#allocation7 + $0x108] sm:$0xff] }
  0x31   :  { %331 = vmatpush.msrb.mxu0 %v246_v36  ;;  %295 = vmatpush.msra.mxu2 %v237_v54  ;;  %v491_v54 = vld [vmem:[#allocation10 + $0x3c0] sm:$0xff] }
  0x32   :  { %351 = vmatpush.msrb.mxu1 %v278_v37  ;;  %315 = vmatpush.msra.mxu3 %v269_v55  ;;  %v256_v37 = vld [vmem:[#allocation7 + $0x128] sm:$0xff] }
  0x33   :  { %332 = vmatpush.msrb.mxu0 %v244_v40  ;;  %296 = vmatpush.msra.mxu2 %v235_v59  ;;  %v492_v55 = vld [vmem:[#allocation10 + $0x3c8] sm:$0xff] }
  0x34   :  { %352 = vmatpush.msrb.mxu1 %v276_v41  ;;  %316 = vmatpush.msra.mxu3 %v267_v60  ;;  %v432_v59 = vld [vmem:[#allocation10 + $0x1e8] sm:$0xff]  ;;  %v427_v60 = vld [vmem:[#allocation10 + $0x1c0] sm:$0xff] }
  0x35   :  { %333 = vmatpush.msrb.mxu0 %v242_v47  ;;  %297 = vmatpush.msra.mxu2 %v233_v63  ;;  %v219_v47 = vld [vmem:[#allocation7] sm:$0xff]  ;;  %v428_v63 = vld [vmem:[#allocation10 + $0x1c8] sm:$0xff] }
  0x36   :  { %353 = vmatpush.msrb.mxu1 %v274_v48  ;;  %317 = vmatpush.msra.mxu3 %v265_v0  ;;  %v251_v48 = vld [vmem:[#allocation7 + $0x100] sm:$0xff] }
  0x37   :  { %334 = vmatpush.msrb.mxu0 %v240_v51  ;;  %298 = vmatpush.msra.mxu2 %v231_v5  ;;  %v495_v51 = vld [vmem:[#allocation10 + $0x3e0] sm:$0xff]  ;;  %v420_v5 = vld [vmem:[#allocation10 + $0x188] sm:$0xff] }
  0x38   :  { %354 = vmatpush.msrb.mxu1 %v272_v52  ;;  %318 = vmatpush.msra.mxu3 %v263_v6  ;;  %v496_v52 = vld [vmem:[#allocation10 + $0x3e8] sm:$0xff]  ;;  %v423_v0 = vld [vmem:[#allocation10 + $0x1a0] sm:$0xff] }
  0x39   :  { %335 = vmatpush.msrb.mxu0 %v238_v57  ;;  %299 = vmatpush.msra.mxu2 %v229_v13  ;;  %v488_v57 = vld [vmem:[#allocation10 + $0x3a8] sm:$0xff]  ;;  %v475_v6 = vld [vmem:[#allocation10 + $0x340] sm:$0xff] }
  0x3a   :  { %355 = vmatpush.msrb.mxu1 %v270_v58  ;;  %319 = vmatpush.msra.mxu3 %v261_v14  ;;  %v431_v58 = vld [vmem:[#allocation10 + $0x1e0] sm:$0xff]  ;;  %v412_v13 = vld [vmem:[#allocation10 + $0x148] sm:$0xff] }
  0x3b   :  { %336 = vmatpush.msrb.mxu0 %v236_v61  ;;  %300 = vmatpush.msra.mxu2 %v227_v19  ;;  %v483_v61 = vld [vmem:[#allocation10 + $0x380] sm:$0xff]  ;;  %v464_v19 = vld [vmem:[#allocation10 + $0x2e8] sm:$0xff] }
  0x3c   :  { %356 = vmatpush.msrb.mxu1 %v268_v62  ;;  %320 = vmatpush.msra.mxu3 %v259_v20  ;;  %v484_v62 = vld [vmem:[#allocation10 + $0x388] sm:$0xff]  ;;  %v467_v14 = vld [vmem:[#allocation10 + $0x300] sm:$0xff] }
  0x3d   :  { %337 = vmatpush.msrb.mxu0 %v234_v3  ;;  %301 = vmatpush.msra.mxu2 %v225_v26  ;;  %v480_v3 = vld [vmem:[#allocation10 + $0x368] sm:$0xff]  ;;  %v403_v20 = vld [vmem:[#allocation10 + $0x100] sm:$0xff] }
  0x3e   :  { %357 = vmatpush.msrb.mxu1 %v266_v4  ;;  %321 = vmatpush.msra.mxu3 %v257_v27  ;;  %v419_v4 = vld [vmem:[#allocation10 + $0x180] sm:$0xff]  ;;  %v456_v27 = vld [vmem:[#allocation10 + $0x2a8] sm:$0xff] }
  0x3f   :  { %338 = vmatpush.msrb.mxu0 %v232_v10  ;;  %302 = vmatpush.msra.mxu2 %v223_v34  ;;  %v471_v10 = vld [vmem:[#allocation10 + $0x320] sm:$0xff]  ;;  %v392_v34 = vld [vmem:[#allocation10 + $0xa8] sm:$0xff] }
  0x40   :  { %358 = vmatpush.msrb.mxu1 %v264_v11  ;;  %322 = vmatpush.msra.mxu3 %v255_v35  ;;  %v472_v11 = vld [vmem:[#allocation10 + $0x328] sm:$0xff]  ;;  %v455_v26 = vld [vmem:[#allocation10 + $0x2a0] sm:$0xff] }
  0x41   :  { %339 = vmatpush.msrb.mxu0 %v230_v16  ;;  %v407_v16 = vld [vmem:[#allocation10 + $0x120] sm:$0xff] }
  0x42   :  { %359 = vmatpush.msrb.mxu1 %v262_v17  ;;  %v408_v17 = vld [vmem:[#allocation10 + $0x128] sm:$0xff]  ;;  %v447_v35 = vld [vmem:[#allocation10 + $0x260] sm:$0xff] }
  0x43   :  { %340 = vmatpush.msrb.mxu0 %v228_v23  ;;  %v460_v23 = vld [vmem:[#allocation10 + $0x2c8] sm:$0xff] }
  0x44   :  { %360 = vmatpush.msrb.mxu1 %v260_v24  ;;  %v399_v24 = vld [vmem:[#allocation10 + $0xe0] sm:$0xff] }
  0x45   :  { %341 = vmatpush.msrb.mxu0 %v226_v30  ;;  %v396_v30 = vld [vmem:[#allocation10 + $0xc8] sm:$0xff] }
  0x46   :  { %361 = vmatpush.msrb.mxu1 %v258_v31  ;;  %v451_v31 = vld [vmem:[#allocation10 + $0x280] sm:$0xff] }
  0x48   :  { %362 = vmatpush.msrb.mxu1 %v256_v37  ;;  %v388_v37 = vld [vmem:[#allocation10 + $0x88] sm:$0xff] }
  0x4a   :  { %363 = vmatpush.msrb.mxu1 %v254_v46 }
  0x4c   :  { %364 = vmatpush.msrb.mxu1 %v252_v50  ;;  %v435_v50 = vld [vmem:[#allocation10 + $0x200] sm:$0xff] }
  0x73   :  { %v1024_v28 = vpop.permute.xlu2 %130 }
  0x74   :  { %vm132_vm4 = vcmp.eq.s32.totalorder %v1024_v28, %v1028_v53  ;;  %v224_v28 = vld [vmem:[#allocation7 + $0x28] sm:$0xff] }
  0x75   :  { %v753_v29 = vsel %vm132_vm4, 1.0, %v972_v7  ;;  %342 = vmatpush.msrb.mxu0 %v224_v28  ;;  %v387_v28 = vld [vmem:[#allocation10 + $0x80] sm:$0xff] }
  0x77   :  { %343 = vmatpush.msrb.mxu0 %v222_v45  ;;  %v380_v45 = vld [vmem:[#allocation10 + $0x48] sm:$0xff] }
  0x79   :  { %344 = vmatpush.msrb.mxu0 %v220_v49 }
  0x7d   :  { %v1030_v56 = vpop.permute.xlu2 %137 }
  0x7e   :  { %vm139_vm5 = vcmp.eq.s32.totalorder %v1030_v56, %v1028_v53  ;;  %v487_v56 = vld [vmem:[#allocation10 + $0x3a0] sm:$0xff] }
  0x7f   :  { %v754_v36 = vsel %vm139_vm5, 1.0, %v972_v7 }
  0x86   :  { %v152_v22 = vpop.permute.xlu2 %151 }
  0x87   :  { %vm153_vm6 = vcmp.eq.s32.totalorder %v152_v22, %v1028_v53  ;;  %v459_v22 = vld [vmem:[#allocation10 + $0x2c0] sm:$0xff] }
  0x88   :  { %v756_v40 = vsel %vm153_vm6, 1.0, %v972_v7 }
  0x8a   :  { %v103_v43 = vpop.permute.xlu0 %102 }
  0x8b   :  { %v1026_v44 = vpop.permute.xlu1 %116  ;;  %vm104_vm0 = vcmp.eq.s32.totalorder %v103_v43, %v1028_v53  ;;  %v221_v43 = vld [vmem:[#allocation7 + $0x10] sm:$0xff] }
  0x8c   :  { %vm118_vm1 = vcmp.eq.s32.totalorder %v1026_v44, %v1028_v53  ;;  %v749_v8 = vsel %vm104_vm0, 1.0, %v972_v7  ;;  %v253_v44 = vld [vmem:[#allocation7 + $0x110] sm:$0xff]  ;;  %303 = vmatpush.msra.mxu2 %v221_v43 }
  0x8d   :  { %v751_v15 = vsel %vm118_vm1, 1.0, %v972_v7  ;;  %323 = vmatpush.msra.mxu3 %v253_v44  ;;  %v440_v43 = vld [vmem:[#allocation10 + $0x228] sm:$0xff]  ;;  %v379_v44 = vld [vmem:[#allocation10 + $0x40] sm:$0xff] }
  0x8e   :  { %304 = vmatpush.msra.mxu2 %v219_v47 }
  0x8f   :  { %324 = vmatpush.msra.mxu3 %v251_v48 }
  0x90   :  { %509 = vmatpush.msrb.mxu2 %v431_v58  ;;  %v494_v58 = vld [vmem:[#allocation10 + $0x3d8] sm:$0xff] }
  0x91   :  { %529 = vmatpush.msrb.mxu3 %v495_v51  ;;  %v436_v51 = vld [vmem:[#allocation10 + $0x208] sm:$0xff] }
  0x92   :  { %510 = vmatpush.msrb.mxu2 %v427_v60  ;;  %v372_v60 = vld [vmem:[#allocation10 + $0x8] sm:$0xff] }
  0x93   :  { %v110_v1 = vpop.permute.xlu0 %109  ;;  %530 = vmatpush.msrb.mxu3 %v491_v54  ;;  %v498_v54 = vld [vmem:[#allocation10 + $0x3f8] sm:$0xff] }
  0x94   :  { %v124_v2 = vpop.permute.xlu1 %123  ;;  %vm111_vm2 = vcmp.eq.s32.totalorder %v110_v1, %v1028_v53  ;;  %v424_v1 = vld [vmem:[#allocation10 + $0x1a8] sm:$0xff]  ;;  %511 = vmatpush.msrb.mxu2 %v423_v0  ;;  %v434_v0 = vld [vmem:[#allocation10 + $0x1f8] sm:$0xff] }
  0x95   :  { %v750_v9 = vsel %vm111_vm2, 1.0, %v972_v7  ;;  %vm125_vm3 = vcmp.eq.s32.totalorder %v124_v2, %v1028_v53  ;;  %531 = vmatpush.msrb.mxu3 %v487_v56  ;;  %v479_v2 = vld [vmem:[#allocation10 + $0x360] sm:$0xff]  ;;  %v376_v56 = vld [vmem:[#allocation10 + $0x28] sm:$0xff] }
  0x96   :  { %v114_v12 = vadd.f32 %v750_v9, %v749_v8  ;;  %v752_v21 = vsel %vm125_vm3, 1.0, %v972_v7  ;;  %v415_v8 = vld [vmem:[#allocation10 + $0x160] sm:$0xff]  ;;  %v416_v9 = vld [vmem:[#allocation10 + $0x168] sm:$0xff]  ;;  %512 = vmatpush.msrb.mxu2 %v419_v4  ;;  %v430_v4 = vld [vmem:[#allocation10 + $0x1d8] sm:$0xff] }
  0x97   :  { %532 = vmatpush.msrb.mxu3 %v483_v61  ;;  %v489_v61 = vld [vmem:[#allocation10 + $0x3b0] sm:$0xff] }
  0x98   :  { %v121_v18 = vadd.f32 %v751_v15, %v114_v12  ;;  %v411_v12 = vld [vmem:[#allocation10 + $0x140] sm:$0xff]  ;;  %513 = vmatpush.msrb.mxu2 %v415_v8  ;;  %v468_v15 = vld [vmem:[#allocation10 + $0x308] sm:$0xff]  ;;  %v426_v8 = vld [vmem:[#allocation10 + $0x1b8] sm:$0xff] }
  0x99   :  { %533 = vmatpush.msrb.mxu3 %v479_v2  ;;  %v486_v2 = vld [vmem:[#allocation10 + $0x398] sm:$0xff] }
  0x9a   :  { %v128_v25 = vadd.f32 %v752_v21, %v121_v18  ;;  %514 = vmatpush.msrb.mxu2 %v411_v12  ;;  %v463_v18 = vld [vmem:[#allocation10 + $0x2e0] sm:$0xff]  ;;  %v404_v21 = vld [vmem:[#allocation10 + $0x108] sm:$0xff]  ;;  %v422_v12 = vld [vmem:[#allocation10 + $0x198] sm:$0xff] }
  0x9b   :  { %534 = vmatpush.msrb.mxu3 %v475_v6  ;;  %v482_v6 = vld [vmem:[#allocation10 + $0x378] sm:$0xff] }
  0x9c   :  { %v135_v32 = vadd.f32 %v753_v29, %v128_v25  ;;  %515 = vmatpush.msrb.mxu2 %v407_v16  ;;  %v400_v25 = vld [vmem:[#allocation10 + $0xe8] sm:$0xff]  ;;  %v395_v29 = vld [vmem:[#allocation10 + $0xc0] sm:$0xff]  ;;  %v418_v16 = vld [vmem:[#allocation10 + $0x178] sm:$0xff] }
  0x9d   :  { %v145_v33 = vpop.permute.xlu1 %144  ;;  %535 = vmatpush.msrb.mxu3 %v471_v10  ;;  %v478_v10 = vld [vmem:[#allocation10 + $0x358] sm:$0xff] }
  0x9e   :  { %vm146_vm7 = vcmp.eq.s32.totalorder %v145_v33, %v1028_v53  ;;  %v142_v38 = vadd.f32 %v754_v36, %v135_v32  ;;  %516 = vmatpush.msrb.mxu2 %v403_v20  ;;  %v452_v32 = vld [vmem:[#allocation10 + $0x288] sm:$0xff]  ;;  %v391_v33 = vld [vmem:[#allocation10 + $0xa0] sm:$0xff]  ;;  %v465_v20 = vld [vmem:[#allocation10 + $0x2f0] sm:$0xff] }
  0x9f   :  { %v755_v39 = vsel %vm146_vm7, 1.0, %v972_v7  ;;  %v476_v7 = vld [vmem:[#allocation10 + $0x348] sm:$0xff]  ;;  %536 = vmatpush.msrb.mxu3 %v467_v14  ;;  %v474_v14 = vld [vmem:[#allocation10 + $0x338] sm:$0xff] }
  0xa0   :  { %v149_v41 = vadd.f32 %v755_v39, %v142_v38  ;;  %517 = vmatpush.msrb.mxu2 %v399_v24  ;;  %v448_v36 = vld [vmem:[#allocation10 + $0x268] sm:$0xff]  ;;  %v443_v38 = vld [vmem:[#allocation10 + $0x240] sm:$0xff]  ;;  %v461_v24 = vld [vmem:[#allocation10 + $0x2d0] sm:$0xff] }
  0xa1   :  { %537 = vmatpush.msrb.mxu3 %v463_v18  ;;  %v444_v39 = vld [vmem:[#allocation10 + $0x248] sm:$0xff]  ;;  %v470_v18 = vld [vmem:[#allocation10 + $0x318] sm:$0xff] }
  0xa2   :  { %v156_v42 = vadd.f32 %v756_v40, %v149_v41  ;;  %518 = vmatpush.msrb.mxu2 %v395_v29  ;;  %v383_v40 = vld [vmem:[#allocation10 + $0x60] sm:$0xff]  ;;  %v384_v41 = vld [vmem:[#allocation10 + $0x68] sm:$0xff]  ;;  %v457_v29 = vld [vmem:[#allocation10 + $0x2b0] sm:$0xff] }
  0xa3   :  { %538 = vmatpush.msrb.mxu3 %v459_v22  ;;  %v466_v22 = vld [vmem:[#allocation10 + $0x2f8] sm:$0xff] }
  0xa4   :  { %757 = vmatmul.msk.f32.vlgmr.msra.gmra.mxu0 %vm173_vm8, %v156_v42  ;;  %758 = vmatmul.msk.f32.vlgmr.msra.gmra.mxu1 %vm173_vm8, %v156_v42  ;;  %v439_v42 = vld [vmem:[#allocation10 + $0x220] sm:$0xff] }
  0xa5   :  { %569 = vmatpush.msra.mxu1 %v496_v52  ;;  %549 = vmatpush.msra.mxu0 %v432_v59  ;;  %v497_v52 = vld [vmem:[#allocation10 + $0x3f0] sm:$0xff]  ;;  %v371_v59 = vld [vmem:[#allocation10] sm:$0xff] }
  0xa6   :  { %539 = vmatpush.msrb.mxu3 %v455_v26  ;;  %519 = vmatpush.msrb.mxu2 %v391_v33  ;;  %v462_v26 = vld [vmem:[#allocation10 + $0x2d8] sm:$0xff]  ;;  %v453_v33 = vld [vmem:[#allocation10 + $0x290] sm:$0xff] }
  0xa7   :  { %570 = vmatpush.msra.mxu1 %v492_v55  ;;  %550 = vmatpush.msra.mxu0 %v428_v63  ;;  %v375_v55 = vld [vmem:[#allocation10 + $0x20] sm:$0xff]  ;;  %v433_v63 = vld [vmem:[#allocation10 + $0x1f0] sm:$0xff] }
  0xa8   :  { %540 = vmatpush.msrb.mxu3 %v451_v31  ;;  %520 = vmatpush.msrb.mxu2 %v387_v28  ;;  %v458_v31 = vld [vmem:[#allocation10 + $0x2b8] sm:$0xff]  ;;  %v449_v28 = vld [vmem:[#allocation10 + $0x270] sm:$0xff] }
  0xa9   :  { %571 = vmatpush.msra.mxu1 %v488_v57  ;;  %551 = vmatpush.msra.mxu0 %v424_v1  ;;  %v493_v57 = vld [vmem:[#allocation10 + $0x3d0] sm:$0xff] }
  0xaa   :  { %541 = vmatpush.msrb.mxu3 %v447_v35  ;;  %521 = vmatpush.msrb.mxu2 %v383_v40  ;;  %v485_v1 = vld [vmem:[#allocation10 + $0x390] sm:$0xff]  ;;  %v454_v35 = vld [vmem:[#allocation10 + $0x298] sm:$0xff] }
  0xab   :  { %572 = vmatpush.msra.mxu1 %v484_v62  ;;  %552 = vmatpush.msra.mxu0 %v420_v5  ;;  %v490_v62 = vld [vmem:[#allocation10 + $0x3b8] sm:$0xff]  ;;  %v481_v5 = vld [vmem:[#allocation10 + $0x370] sm:$0xff] }
  0xac   :  { %542 = vmatpush.msrb.mxu3 %v443_v38  ;;  %522 = vmatpush.msrb.mxu2 %v379_v44  ;;  %v450_v38 = vld [vmem:[#allocation10 + $0x278] sm:$0xff]  ;;  %v445_v40 = vld [vmem:[#allocation10 + $0x250] sm:$0xff] }
  0xad   :  { %573 = vmatpush.msra.mxu1 %v480_v3  ;;  %553 = vmatpush.msra.mxu0 %v416_v9  ;;  %v429_v3 = vld [vmem:[#allocation10 + $0x1d0] sm:$0xff] }
  0xae   :  { %543 = vmatpush.msrb.mxu3 %v439_v42  ;;  %523 = vmatpush.msrb.mxu2 %v375_v55  ;;  %v477_v9 = vld [vmem:[#allocation10 + $0x350] sm:$0xff]  ;;  %v446_v42 = vld [vmem:[#allocation10 + $0x258] sm:$0xff] }
  0xaf   :  { %574 = vmatpush.msra.mxu1 %v476_v7  ;;  %554 = vmatpush.msra.mxu0 %v412_v13  ;;  %v425_v7 = vld [vmem:[#allocation10 + $0x1b0] sm:$0xff]  ;;  %v378_v55 = vld [vmem:[#allocation10 + $0x38] sm:$0xff] }
  0xb0   :  { %544 = vmatpush.msrb.mxu3 %v435_v50  ;;  %524 = vmatpush.msrb.mxu2 %v371_v59  ;;  %v473_v13 = vld [vmem:[#allocation10 + $0x330] sm:$0xff]  ;;  %v438_v50 = vld [vmem:[#allocation10 + $0x218] sm:$0xff] }
  0xb1   :  { %575 = vmatpush.msra.mxu1 %v472_v11  ;;  %555 = vmatpush.msra.mxu0 %v408_v17  ;;  %v421_v11 = vld [vmem:[#allocation10 + $0x190] sm:$0xff] }
  0xb2   :  { %v469_v17 = vld [vmem:[#allocation10 + $0x310] sm:$0xff] }
  0xb3   :  { %576 = vmatpush.msra.mxu1 %v468_v15  ;;  %556 = vmatpush.msra.mxu0 %v404_v21  ;;  %v417_v15 = vld [vmem:[#allocation10 + $0x170] sm:$0xff]  ;;  %v414_v21 = vld [vmem:[#allocation10 + $0x158] sm:$0xff] }
  0xb4   :  { %v441_v44 = vld [vmem:[#allocation10 + $0x230] sm:$0xff] }
  0xb5   :  { %577 = vmatpush.msra.mxu1 %v464_v19  ;;  %557 = vmatpush.msra.mxu0 %v400_v25  ;;  %v413_v19 = vld [vmem:[#allocation10 + $0x150] sm:$0xff]  ;;  %v410_v25 = vld [vmem:[#allocation10 + $0x138] sm:$0xff] }
  0xb7   :  { %578 = vmatpush.msra.mxu1 %v460_v23  ;;  %558 = vmatpush.msra.mxu0 %v396_v30  ;;  %v409_v23 = vld [vmem:[#allocation10 + $0x130] sm:$0xff]  ;;  %v406_v30 = vld [vmem:[#allocation10 + $0x118] sm:$0xff] }
  0xb9   :  { %579 = vmatpush.msra.mxu1 %v456_v27  ;;  %559 = vmatpush.msra.mxu0 %v392_v34  ;;  %v405_v27 = vld [vmem:[#allocation10 + $0x110] sm:$0xff]  ;;  %v402_v34 = vld [vmem:[#allocation10 + $0xf8] sm:$0xff] }
  0xbb   :  { %580 = vmatpush.msra.mxu1 %v452_v32  ;;  %560 = vmatpush.msra.mxu0 %v388_v37  ;;  %v401_v32 = vld [vmem:[#allocation10 + $0xf0] sm:$0xff]  ;;  %v398_v37 = vld [vmem:[#allocation10 + $0xd8] sm:$0xff] }
  0xbd   :  { %581 = vmatpush.msra.mxu1 %v448_v36  ;;  %561 = vmatpush.msra.mxu0 %v384_v41  ;;  %v397_v36 = vld [vmem:[#allocation10 + $0xd0] sm:$0xff]  ;;  %v394_v41 = vld [vmem:[#allocation10 + $0xb8] sm:$0xff] }
  0xbf   :  { %582 = vmatpush.msra.mxu1 %v444_v39  ;;  %562 = vmatpush.msra.mxu0 %v380_v45  ;;  %v393_v39 = vld [vmem:[#allocation10 + $0xb0] sm:$0xff]  ;;  %v390_v45 = vld [vmem:[#allocation10 + $0x98] sm:$0xff] }
  0xc1   :  { %583 = vmatpush.msra.mxu1 %v440_v43  ;;  %563 = vmatpush.msra.mxu0 %v376_v56  ;;  %v389_v43 = vld [vmem:[#allocation10 + $0x90] sm:$0xff] }
  0xc2   :  { %v373_v56 = vld [vmem:[#allocation10 + $0x10] sm:$0xff] }
  0xc3   :  { %584 = vmatpush.msra.mxu1 %v436_v51  ;;  %564 = vmatpush.msra.mxu0 %v372_v60  ;;  %v381_v51 = vld [vmem:[#allocation10 + $0x50] sm:$0xff] }
 0x121   :  { %v194_v46 = vpop.f32.mrf.mxu0  ;;  %v214_v47 = vpop.f32.mrf.mxu1 }
 0x122   :  { %v217_v48 = vmul.f32 0.125, %v194_v46  ;;  %v218_v49 = vmul.f32 0.125, %v214_v47  ;;  %v442_v46 = vld [vmem:[#allocation10 + $0x238] sm:$0xff]  ;;  %v385_v47 = vld [vmem:[#allocation10 + $0x70] sm:$0xff] }
 0x124   :  { %305 = vmatmul.f32.vlgmr.msra.gmra.mxu2 %v217_v48  ;;  %325 = vmatmul.f32.vlgmr.msra.gmra.mxu3 %v218_v49 }
 0x125   :  { %345 = vmatmul.f32.vlgmr.msrb.gmra.mxu0 %v217_v48  ;;  %365 = vmatmul.f32.vlgmr.msrb.gmra.mxu1 %v218_v49  ;;  %v437_v48 = vld [vmem:[#allocation10 + $0x210] sm:$0xff]  ;;  %v386_v49 = vld [vmem:[#allocation10 + $0x78] sm:$0xff] }
 0x126   :  { %609 = vmatpush.msra.mxu3 %v497_v52  ;;  %649 = vmatpush.msrb.mxu1 %v498_v54  ;;  %v382_v52 = vld [vmem:[#allocation10 + $0x58] sm:$0xff]  ;;  %v377_v54 = vld [vmem:[#allocation10 + $0x30] sm:$0xff] }
 0x127   :  { %589 = vmatpush.msra.mxu2 %v433_v63  ;;  %629 = vmatpush.msrb.mxu0 %v434_v0 }
 0x128   :  { %610 = vmatpush.msra.mxu3 %v493_v57  ;;  %650 = vmatpush.msrb.mxu1 %v494_v58  ;;  %v374_v57 = vld [vmem:[#allocation10 + $0x18] sm:$0xff] }
 0x129   :  { %590 = vmatpush.msra.mxu2 %v429_v3  ;;  %630 = vmatpush.msrb.mxu0 %v430_v4  ;;  %v283_v58 = vld [vmem:[#allocation8] sm:$0x3] }
 0x12a   :  { %611 = vmatpush.msra.mxu3 %v489_v61  ;;  %651 = vmatpush.msrb.mxu1 %v490_v62  ;;  %v286_v59 = vperm.slane %v283_v58, 1  ;;  %v285_v63 = vperm.slane %v283_v58, 0 }
 0x12b   :  { %591 = vmatpush.msra.mxu2 %v425_v7  ;;  %631 = vmatpush.msrb.mxu0 %v426_v8  ;;  %v499_v7 = vld [vmem:[%s1086_s5] sm:$0xf]  ;;  %s973_s5 = smov [#allocation11]  }
 0x12c   :  { %612 = vmatpush.msra.mxu3 %v485_v1  ;;  %652 = vmatpush.msrb.mxu1 %v486_v2  ;;  %v502_v8 = vperm.slane %v499_v7, 1  ;;  %s735_s23 = sshll.u32 %s973_s5, 4  ;;  %s736_s23 = int_to_ptr.vmem [resolvable:$true] %s735_s23 }
 0x12d   :  { %592 = vmatpush.msra.mxu2 %v421_v11  ;;  %632 = vmatpush.msrb.mxu0 %v422_v12 }
 0x12e   :  { %613 = vmatpush.msra.mxu3 %v481_v5  ;;  %653 = vmatpush.msrb.mxu1 %v482_v6 }
 0x12f   :  { %593 = vmatpush.msra.mxu2 %v417_v15  ;;  %633 = vmatpush.msrb.mxu0 %v418_v16 }
 0x130   :  { %614 = vmatpush.msra.mxu3 %v477_v9  ;;  %654 = vmatpush.msrb.mxu1 %v478_v10 }
 0x131   :  { %594 = vmatpush.msra.mxu2 %v413_v19  ;;  %634 = vmatpush.msrb.mxu0 %v414_v21 }
 0x132   :  { %615 = vmatpush.msra.mxu3 %v473_v13  ;;  %655 = vmatpush.msrb.mxu1 %v474_v14  ;;  %v501_v13 = vperm.slane %v499_v7, 0 }
 0x133   :  { %595 = vmatpush.msra.mxu2 %v409_v23  ;;  %635 = vmatpush.msrb.mxu0 %v410_v25 }
 0x134   :  { %616 = vmatpush.msra.mxu3 %v469_v17  ;;  %656 = vmatpush.msrb.mxu1 %v470_v18 }
 0x135   :  { %596 = vmatpush.msra.mxu2 %v405_v27  ;;  %636 = vmatpush.msrb.mxu0 %v406_v30 }
 0x136   :  { %617 = vmatpush.msra.mxu3 %v465_v20  ;;  %657 = vmatpush.msrb.mxu1 %v466_v22  ;;  %v503_v20 = vperm.slane %v499_v7, 2  ;;  %v504_v22 = vperm.slane %v499_v7, 3 }
 0x137   :  { %597 = vmatpush.msra.mxu2 %v401_v32  ;;  %637 = vmatpush.msrb.mxu0 %v402_v34 }
 0x138   :  { %618 = vmatpush.msra.mxu3 %v461_v24  ;;  %658 = vmatpush.msrb.mxu1 %v462_v26 }
 0x139   :  { %598 = vmatpush.msra.mxu2 %v397_v36  ;;  %638 = vmatpush.msrb.mxu0 %v398_v37 }
 0x13a   :  { %619 = vmatpush.msra.mxu3 %v457_v29  ;;  %659 = vmatpush.msrb.mxu1 %v458_v31 }
 0x13b   :  { %599 = vmatpush.msra.mxu2 %v393_v39  ;;  %639 = vmatpush.msrb.mxu0 %v394_v41 }
 0x13c   :  { %620 = vmatpush.msra.mxu3 %v453_v33  ;;  %660 = vmatpush.msrb.mxu1 %v454_v35 }
 0x13d   :  { %600 = vmatpush.msra.mxu2 %v389_v43  ;;  %640 = vmatpush.msrb.mxu0 %v390_v45 }
 0x13e   :  { %621 = vmatpush.msra.mxu3 %v449_v28  ;;  %661 = vmatpush.msrb.mxu1 %v450_v38 }
 0x13f   :  { %601 = vmatpush.msra.mxu2 %v385_v47  ;;  %641 = vmatpush.msrb.mxu0 %v386_v49 }
 0x140   :  { %622 = vmatpush.msra.mxu3 %v445_v40  ;;  %662 = vmatpush.msrb.mxu1 %v446_v42 }
 0x141   :  { %602 = vmatpush.msra.mxu2 %v381_v51  ;;  %642 = vmatpush.msrb.mxu0 %v382_v52 }
 0x142   :  { %623 = vmatpush.msra.mxu3 %v441_v44  ;;  %663 = vmatpush.msrb.mxu1 %v442_v46 }
 0x143   :  { %603 = vmatpush.msra.mxu2 %v377_v54  ;;  %643 = vmatpush.msrb.mxu0 %v378_v55 }
 0x144   :  { %624 = vmatpush.msra.mxu3 %v437_v48  ;;  %664 = vmatpush.msrb.mxu1 %v438_v50 }
 0x145   :  { %604 = vmatpush.msra.mxu2 %v373_v56  ;;  %644 = vmatpush.msrb.mxu0 %v374_v57 }
 0x1a2   :  { %v346_v60 = vpop.f32.mrf.mxu0  ;;  %v366_v62 = vpop.f32.mrf.mxu1 }
 0x1a3   :  { %v347_v61 = vadd.f32 %v346_v60, %v286_v59 }
 0x1a5   :  { %v367_v0 = vadd.f32 %v366_v62, %v347_v61 }
 0x1a7   :  { %v370_v1 = vmax.f32 %v367_v0, 0.0  ;;  %v306_v2 = vpop.f32.mrf.mxu2  ;;  %v326_v4 = vpop.f32.mrf.mxu3 }
 0x1a8   :  { %v307_v3 = vadd.f32 %v306_v2, %v285_v63 }
 0x1a9   :  { %545 = vmatmul.f32.vlgmr.msrb.gmra.mxu3 %v370_v1  ;;  %585 = vmatmul.f32.vlgmr.msra.gmra.mxu1 %v370_v1 }
 0x1aa   :  { %v327_v5 = vadd.f32 %v326_v4, %v307_v3 }
 0x1ac   :  { %v369_v6 = vmax.f32 %v327_v5, 0.0 }
 0x1ae   :  { %525 = vmatmul.f32.vlgmr.msrb.gmra.mxu2 %v369_v6  ;;  %565 = vmatmul.f32.vlgmr.msra.gmra.mxu0 %v369_v6 }
 0x1b1   :  { %625 = vmatmul.f32.vlgmr.msra.gmra.mxu3 %v370_v1  ;;  %665 = vmatmul.f32.vlgmr.msrb.gmra.mxu1 %v370_v1 }
 0x1b6   :  { %605 = vmatmul.f32.vlgmr.msra.gmra.mxu2 %v369_v6  ;;  %645 = vmatmul.f32.vlgmr.msrb.gmra.mxu0 %v369_v6 }
 0x226   :  { %v586_v11 = vpop.f32.mrf.mxu1 }
 0x22b   :  { %v566_v9 = vpop.f32.mrf.mxu0 }
 0x22c   :  { %v567_v10 = vadd.f32 %v566_v9, %v502_v8  ;;  %v546_v15 = vpop.f32.mrf.mxu3 }
 0x22e   :  { %v587_v12 = vadd.f32 %v586_v11, %v567_v10  ;;  %v666_v30 = vpop.f32.mrf.mxu1 }
 0x230   :  { %v687_v14 = vsel %vm684_vm9, %v587_v12, -inf }
 0x231   :  { %688 = vmax.xlane.f32.xlu1 %v687_v14  ;;  %v526_v16 = vpop.f32.mrf.mxu2 }
 0x232   :  { %v527_v17 = vadd.f32 %v526_v16, %v501_v13 }
 0x233   :  { %v646_v25 = vpop.f32.mrf.mxu0 }
 0x234   :  { %v547_v18 = vadd.f32 %v546_v15, %v527_v17  ;;  %v626_v24 = vpop.f32.mrf.mxu3  ;;  %v647_v27 = vadd.f32 %v646_v25, %v504_v22 }
 0x236   :  { %v672_v19 = vsel %vm669_vm10, %v547_v18, -inf  ;;  %v667_v31 = vadd.f32 %v666_v30, %v647_v27 }
 0x237   :  { %673 = vmax.xlane.f32.xlu0 %v672_v19 }
 0x238   :  { %v714_v32 = vsel %vm711_vm11, %v667_v31, -inf }
 0x239   :  { %v606_v21 = vpop.f32.mrf.mxu2 }
 0x23a   :  { %v607_v23 = vadd.f32 %v606_v21, %v503_v20 }
 0x23c   :  { %v627_v26 = vadd.f32 %v626_v24, %v607_v23 }
 0x23e   :  { %v699_v29 = vsel %vm684_vm9, %v627_v26, -inf }
 0x23f   :  { %700 = vmax.xlane.f32.xlu2 %v699_v29 }
 0x247   :  { %715 = vmax.xlane.f32.xlu2 %v714_v32 }
 0x2a4   :  { %v689_v33 = vpop.xlane.xlu1 %688 }
 0x2a5   :  { %v690_v34 = vsub.f32 %v687_v14, %v689_v33 }
 0x2a7   :  { %v691_v35 = vmul.f32 1.442695, %v690_v34 }
 0x2a9   :  { %787 = vpow2.f32 %v691_v35 }
 0x2aa   :  { %v674_v36 = vpop.xlane.xlu0 %673 }
 0x2ab   :  { %v675_v28 = vsub.f32 %v672_v19, %v674_v36 }
 0x2ad   :  { %v676_v37 = vmul.f32 1.442695, %v675_v28 }
 0x2af   :  { %v788_v38 = vpop.eup %787  ;;  %789 = vpow2.f32 %v676_v37 }
 0x2b0   :  { %693 = vadd.xlane.f32.xlu1 %v788_v38 }
 0x2b2   :  { %v701_v39 = vpop.xlane.xlu2 %700 }
 0x2b3   :  { %v702_v40 = vsub.f32 %v699_v29, %v701_v39 }
 0x2b5   :  { %v790_v41 = vpop.eup %789  ;;  %v703_v42 = vmul.f32 1.442695, %v702_v40 }
 0x2b6   :  { %678 = vadd.xlane.f32.xlu0 %v790_v41 }
 0x2b7   :  { %791 = vpow2.f32 %v703_v42 }
 0x2ba   :  { %v716_v43 = vpop.xlane.xlu2 %715 }
 0x2bb   :  { %v717_v44 = vsub.f32 %v714_v32, %v716_v43 }
 0x2bd   :  { %v792_v45 = vpop.eup %791  ;;  %v718_v46 = vmul.f32 1.442695, %v717_v44 }
 0x2be   :  { %705 = vadd.xlane.f32.xlu2 %v792_v45 }
 0x2bf   :  { %793 = vpow2.f32 %v718_v46 }
 0x2c5   :  { %v794_v47 = vpop.eup %793 }
 0x2c6   :  { %720 = vadd.xlane.f32.xlu0 %v794_v47 }
 0x323   :  { %v694_v48 = vpop.xlane.xlu1 %693 }
 0x324   :  { %795 = vlog2.f32 %v694_v48 }
 0x329   :  { %v679_v49 = vpop.xlane.xlu0 %678 }
 0x32a   :  { %v796_v50 = vpop.eup %795  ;;  %797 = vlog2.f32 %v679_v49 }
 0x32b   :  { %v696_v51 = vmul.f32 0.6931472, %v796_v50 }
 0x32d   :  { %v697_v52 = vsub.f32 %v690_v34, %v696_v51 }
 0x32f   :  { %v698_v54 = vsel %vm684_vm9, %v697_v52, 0.0 }
 0x330   :  { %v798_v55 = vpop.eup %797  ;;  %727 = vst [vmem:[#allocation11 + $0x8] sm:$0xff] %v698_v54 }
 0x331   :  { %v681_v56 = vmul.f32 0.6931472, %v798_v55  ;;  %v706_v57 = vpop.xlane.xlu2 %705 }
 0x332   :  { %799 = vlog2.f32 %v706_v57 }
 0x333   :  { %v682_v58 = vsub.f32 %v675_v28, %v681_v56 }
 0x335   :  { %v683_v59 = vsel %vm669_vm10, %v682_v58, 0.0 }
 0x336   :  { %726 = vst [vmem:[#allocation11] sm:$0xff] %v683_v59 }
 0x338   :  { %v800_v60 = vpop.eup %799 }
 0x339   :  { %v708_v61 = vmul.f32 0.6931472, %v800_v60  ;;  %v721_v62 = vpop.xlane.xlu0 %720 }
 0x33a   :  { %801 = vlog2.f32 %v721_v62 }
 0x33b   :  { %v709_v63 = vsub.f32 %v702_v40, %v708_v61 }
 0x33d   :  { %v710_v0 = vsel %vm684_vm9, %v709_v63, 0.0 }
 0x33e   :  { %728 = vst [vmem:[#allocation11 + $0x10] sm:$0xff] %v710_v0 }
 0x340   :  { %v802_v1 = vpop.eup %801 }
 0x341   :  { %v723_v2 = vmul.f32 0.6931472, %v802_v1 }
 0x343   :  { %v724_v3 = vsub.f32 %v717_v44, %v723_v2 }
 0x345   :  { %v725_v4 = vsel %vm711_vm11, %v724_v3, 0.0 }
 0x346   :  { %729 = vst [vmem:[#allocation11 + $0x18] sm:$0xff] %v725_v4 }
 0x347   :  { %740 = dma.vmem_to_hbm [thread:$0]  %s736_s23, 512, %s738_s26, [#allocation4]  }
 0x348   :  { %953 = dma.done.wait [#allocation4], 512  }
 0x349   :  { %954 = vsyncadd [#allocation4], 4294966784 }
 0x34a   :  { %745 = vsyncpa [#allocation3], 1 }
 0x34b   :  { %746 = vsyncpa [#allocation6], 1 }
 0x34c   :  { %747 = vsyncpa [#allocation9], 1 }
 0x34d   :  { %748 = vsyncpa [#allocation4], 1 }

</bundles_post_ra>
